<compile_context>
chip_gen: v5e
topology: v5e:2x2
jax: 0.10.0
libtpu: 0.0.40
codegen_flags: <defaults>
</compile_context>

<pallas_src>
import functools

import jax
import jax.numpy as jnp
from jax import lax
from jax.experimental import pallas as pl
from jax.experimental.pallas import tpu as pltpu

NUM_CLASSES = 3
EPS = 1e-7
LANES = 128


def _iou_sums_kernel(hw_valid, mask_needed, logits_ref, labels_ref,
                     inter_ref, card_ref):
    """Accumulate per-(batch, class) intersection / cardinality lane-sums.

    logits_ref: (1, C, R, 128) tile of logits (native dtype)
    labels_ref: (1, R, 128) tile of integer labels
    inter_ref / card_ref: (1, C, 1, 128) per-batch outputs, resident across j
    """
    j = pl.program_id(1)
    n_tiles = pl.num_programs(1)

    @pl.when(j == 0)
    def _():
        inter_ref[...] = jnp.zeros_like(inter_ref)
        card_ref[...] = jnp.zeros_like(card_ref)

    C = inter_ref.shape[1]
    R = logits_ref.shape[2]
    L = logits_ref.shape[3]

    def accumulate(apply_mask):
        x = logits_ref[0].astype(jnp.float32)          # (C, R, L)
        lab = labels_ref[0].astype(jnp.int32)          # (R, L)

        planes = [x[c] for c in range(C)]              # C x (R, L)

        if apply_mask:
            row = lax.broadcasted_iota(jnp.int32, (R, L), 0)
            lane = lax.broadcasted_iota(jnp.int32, (R, L), 1)
            flat = (j * R + row) * L + lane
            valid = flat < hw_valid                    # (R, L) bool
            # zero garbage/padded columns before exp (avoid NaN propagation)
            planes = [jnp.where(valid, p, 0.0) for p in planes]

        # channel softmax as elementwise ops over C full (R, L) planes
        m = planes[0]
        for c in range(1, C):
            m = jnp.maximum(m, planes[c])
        es = [jnp.exp(p - m) for p in planes]          # EUP
        denom = es[0]
        for c in range(1, C):
            denom = denom + es[c]
        inv = pl.reciprocal(denom, approx=False)

        for c in range(C):
            p_c = es[c] * inv                          # (R, L) softmax prob
            is_c = lab == c                            # (R, L) one-hot (bool)
            if apply_mask:
                p_c = jnp.where(valid, p_c, 0.0)
                is_c = jnp.logical_and(is_c, valid)
            oh_c = is_c.astype(jnp.float32)
            inter_c = jnp.where(is_c, p_c, 0.0)
            # sublane tree-reduction to (1, L); lane/batch sums finish in glue
            inter_ref[0, c] += jnp.sum(inter_c, axis=0, keepdims=True)
            card_ref[0, c] += (jnp.sum(p_c, axis=0, keepdims=True)
                               + jnp.sum(oh_c, axis=0, keepdims=True))

    if mask_needed:
        # only the last spatial tile can contain padded / out-of-bounds columns
        @pl.when(j == n_tiles - 1)
        def _():
            accumulate(True)

        @pl.when(j < n_tiles - 1)
        def _():
            accumulate(False)
    else:
        accumulate(False)


def iou_loss(logits, true, num_classes=NUM_CLASSES, eps=EPS, tile_rows=1024):
    """Equivalent of IoULoss(num_classes).forward(logits, true).

    logits: (N, C, H, W) float (f32 or bf16; cast to f32 inside the kernel)
    true:   (N, 1, H, W) integer class labels in [0, C)
    returns scalar float32 loss.
    """
    N, C, H, W = logits.shape
    assert C == num_classes
    HW = H * W
    HW_pad = ((HW + LANES - 1) // LANES) * LANES
    rows = HW_pad // LANES

    # free reshapes of the native NCHW layout (no transpose)
    logits_r = logits.reshape(N, C, HW)
    labels_r = true.reshape(N, HW)
    if HW_pad != HW:
        # only hit when H*W is not a multiple of 128
        logits_r = jnp.pad(logits_r, ((0, 0), (0, 0), (0, HW_pad - HW)))
        labels_r = jnp.pad(labels_r, ((0, 0), (0, HW_pad - HW)))
    logits_r = logits_r.reshape(N, C, rows, LANES)
    labels_r = labels_r.reshape(N, rows, LANES)

    # tile choice: multiple of 8 sublanes unless it spans the full extent
    tr = min(tile_rows, rows)
    if tr < rows:
        tr = max(8, (tr // 8) * 8)
    num_tiles = pl.cdiv(rows, tr)
    mask_needed = (HW_pad != HW) or (rows % tr != 0)

    grid = (N, num_tiles)

    out_i, out_c = pl.pallas_call(
        functools.partial(_iou_sums_kernel, HW, mask_needed),
        out_shape=(
            jax.ShapeDtypeStruct((N, C, 1, LANES), jnp.float32),
            jax.ShapeDtypeStruct((N, C, 1, LANES), jnp.float32),
        ),
        grid_spec=pltpu.PrefetchScalarGridSpec(
            num_scalar_prefetch=0,
            grid=grid,
            in_specs=[
                pl.BlockSpec((1, C, tr, LANES), lambda n, j: (n, 0, j, 0)),
                pl.BlockSpec((1, tr, LANES), lambda n, j: (n, j, 0)),
            ],
            out_specs=[
                pl.BlockSpec((1, C, 1, LANES), lambda n, j: (n, 0, 0, 0)),
                pl.BlockSpec((1, C, 1, LANES), lambda n, j: (n, 0, 0, 0)),
            ],
        ),
        compiler_params=pltpu.CompilerParams(
            dimension_semantics=("parallel", "arbitrary")),
    )(logits_r, labels_r)

    inter = jnp.sum(out_i, axis=(0, 2, 3))   # (C,)
    card = jnp.sum(out_c, axis=(0, 2, 3))    # (C,)
    union = card - inter
    jacc = jnp.mean(inter / (union + eps))
    return (1.0 - jacc).astype(jnp.float32)


def _iou_loss_ref(logits, true, num_classes=NUM_CLASSES, eps=EPS):
    """Pure-JAX reference mirroring the PyTorch module."""
    labels = true[:, 0]                                   # (N, H, W)
    one_hot = jax.nn.one_hot(labels, num_classes, dtype=jnp.float32)
    one_hot = jnp.transpose(one_hot, (0, 3, 1, 2))        # (N, C, H, W)
    probas = jax.nn.softmax(logits.astype(jnp.float32), axis=1)
    dims = (0, 2, 3)
    inter = jnp.sum(probas * one_hot, axis=dims)
    card = jnp.sum(probas + one_hot, axis=dims)
    union = card - inter
    return 1.0 - jnp.mean(inter / (union + eps))


if __name__ == "__main__":
    key = jax.random.PRNGKey(0)
    k1, k2 = jax.random.split(key)

    N, C, H, W = 2, NUM_CLASSES, 16, 16
    logits = jax.random.normal(k1, (N, C, H, W), dtype=jnp.float32)
    true = jax.random.randint(k2, (N, 1, H, W), 0, C, dtype=jnp.int32)

    loss = jax.block_until_ready(iou_loss(logits, true))
    loss_ref = jax.block_until_ready(_iou_loss_ref(logits, true))

    assert jnp.allclose(loss, loss_ref, atol=1e-5, rtol=1e-5), (loss, loss_ref)
    print("KERNEL_OK")
</pallas_src>

<mosaic_0001>
module attributes {stable_mosaic.version = 11 : i64} {
  func.func @_iou_sums_kernel(%arg0: i32, %arg1: i32, %arg2: memref<1x3x2x128xf32, #tpu.memory_space<vmem>>, %arg3: memref<1x2x128xi32, #tpu.memory_space<vmem>>, %arg4: memref<1x3x1x128xf32, #tpu.memory_space<vmem>>, %arg5: memref<1x3x1x128xf32, #tpu.memory_space<vmem>>) attributes {dimension_semantics = [#tpu.dimension_semantics<parallel>, #tpu.dimension_semantics<arbitrary>], iteration_bounds = array<i64: 2, 1>, scalar_prefetch = 0 : i64, scratch_operands = 0 : i64, tpu.core_type = #tpu.core_type<tc>, window_params = [{transform_indices = @transform_0, window_bounds = array<i64: 1, 3, 2, 128>}, {transform_indices = @transform_1, window_bounds = array<i64: 1, 2, 128>}, {transform_indices = @transform_2, window_bounds = array<i64: 1, 3, 1, 128>}, {transform_indices = @transform_3, window_bounds = array<i64: 1, 3, 1, 128>}]} {
    %c0_i32 = arith.constant 0 : i32
    %0 = arith.cmpi eq, %arg1, %c0_i32 : i32
    %1 = arith.extui %0 : i1 to i32
    %c0_i32_0 = arith.constant 0 : i32
    %2 = arith.cmpi ne, %1, %c0_i32_0 : i32
    scf.if %2 {
      %cst_65 = arith.constant 0.000000e+00 : f32
      %102 = vector.broadcast %cst_65 : f32 to vector<1x3x1x128xf32>
      %c0_66 = arith.constant 0 : index
      %c0_67 = arith.constant 0 : index
      %c0_68 = arith.constant 0 : index
      %c0_69 = arith.constant 0 : index
      %103 = vector.load %arg4[%c0_66, %c0_67, %c0_68, %c0_69] : memref<1x3x1x128xf32, #tpu.memory_space<vmem>>, vector<1x3x1x128xf32>
      tpu.vector_store %arg4[%c0_66, %c0_67, %c0_68, %c0_69], %102 {strides = array<i32>} : memref<1x3x1x128xf32, #tpu.memory_space<vmem>>, vector<1x3x1x128xf32>,
      %cst_70 = arith.constant 0.000000e+00 : f32
      %104 = vector.broadcast %cst_70 : f32 to vector<1x3x1x128xf32>
      %c0_71 = arith.constant 0 : index
      %c0_72 = arith.constant 0 : index
      %c0_73 = arith.constant 0 : index
      %c0_74 = arith.constant 0 : index
      %105 = vector.load %arg5[%c0_71, %c0_72, %c0_73, %c0_74] : memref<1x3x1x128xf32, #tpu.memory_space<vmem>>, vector<1x3x1x128xf32>
      tpu.vector_store %arg5[%c0_71, %c0_72, %c0_73, %c0_74], %104 {strides = array<i32>} : memref<1x3x1x128xf32, #tpu.memory_space<vmem>>, vector<1x3x1x128xf32>,
    } else {
    }
    %c0 = arith.constant 0 : index
    %c0_1 = arith.constant 0 : index
    %c0_2 = arith.constant 0 : index
    %c0_3 = arith.constant 0 : index
    %3 = vector.load %arg2[%c0, %c0_1, %c0_2, %c0_3] : memref<1x3x2x128xf32, #tpu.memory_space<vmem>>, vector<1x3x2x128xf32>
    %4 = vector.shape_cast %3 : vector<1x3x2x128xf32> to vector<3x2x128xf32>
    %c0_4 = arith.constant 0 : index
    %c0_5 = arith.constant 0 : index
    %c0_6 = arith.constant 0 : index
    %5 = vector.load %arg3[%c0_4, %c0_5, %c0_6] : memref<1x2x128xi32, #tpu.memory_space<vmem>>, vector<1x2x128xi32>
    %6 = vector.shape_cast %5 : vector<1x2x128xi32> to vector<2x128xi32>
    %7 = vector.extract_strided_slice %4 {offsets = [0, 0, 0], sizes = [1, 2, 128], strides = [1, 1, 1]} : vector<3x2x128xf32> to vector<1x2x128xf32>
    %8 = vector.shape_cast %7 : vector<1x2x128xf32> to vector<2x128xf32>
    %9 = vector.extract_strided_slice %4 {offsets = [1, 0, 0], sizes = [1, 2, 128], strides = [1, 1, 1]} : vector<3x2x128xf32> to vector<1x2x128xf32>
    %10 = vector.shape_cast %9 : vector<1x2x128xf32> to vector<2x128xf32>
    %11 = vector.extract_strided_slice %4 {offsets = [2, 0, 0], sizes = [1, 2, 128], strides = [1, 1, 1]} : vector<3x2x128xf32> to vector<1x2x128xf32>
    %12 = vector.shape_cast %11 : vector<1x2x128xf32> to vector<2x128xf32>
    %13 = arith.maximumf %8, %10 : vector<2x128xf32>
    %14 = arith.maximumf %13, %12 : vector<2x128xf32>
    %15 = arith.subf %8, %14 : vector<2x128xf32>
    %16 = math.exp %15 : vector<2x128xf32>
    %17 = arith.subf %10, %14 : vector<2x128xf32>
    %18 = math.exp %17 : vector<2x128xf32>
    %19 = arith.subf %12, %14 : vector<2x128xf32>
    %20 = math.exp %19 : vector<2x128xf32>
    %21 = arith.addf %16, %18 : vector<2x128xf32>
    %22 = arith.addf %21, %20 : vector<2x128xf32>
    %23 = tpu.reciprocal %22 : vector<2x128xf32> -> vector<2x128xf32>
    %24 = arith.mulf %16, %23 : vector<2x128xf32>
    %c0_i32_7 = arith.constant 0 : i32
    %25 = vector.broadcast %c0_i32_7 : i32 to vector<2x128xi32>
    %26 = arith.cmpi eq, %6, %25 : vector<2x128xi32>
    %27 = arith.extui %26 : vector<2x128xi1> to vector<2x128xi32>
    %28 = arith.sitofp %27 : vector<2x128xi32> to vector<2x128xf32>
    %cst = arith.constant 0.000000e+00 : f32
    %29 = vector.broadcast %cst : f32 to vector<2x128xf32>
    %30 = arith.select %26, %24, %29 : vector<2x128xi1>, vector<2x128xf32>
    %c0_8 = arith.constant 0 : index
    %c0_9 = arith.constant 0 : index
    %c0_10 = arith.constant 0 : index
    %c0_11 = arith.constant 0 : index
    %31 = vector.load %arg4[%c0_8, %c0_9, %c0_10, %c0_11] : memref<1x3x1x128xf32, #tpu.memory_space<vmem>>, vector<1x1x1x128xf32>
    %32 = vector.shape_cast %31 : vector<1x1x1x128xf32> to vector<1x128xf32>
    %cst_12 = arith.constant dense<0.000000e+00> : vector<128xf32>
    %33 = vector.multi_reduction <add>, %30, %cst_12 [0] : vector<2x128xf32> to vector<128xf32>
    %34 = vector.shape_cast %33 : vector<128xf32> to vector<1x128xf32>
    %35 = arith.addf %32, %34 : vector<1x128xf32>
    %c0_13 = arith.constant 0 : index
    %c0_14 = arith.constant 0 : index
    %c0_15 = arith.constant 0 : index
    %c0_16 = arith.constant 0 : index
    %36 = vector.load %arg4[%c0_13, %c0_14, %c0_15, %c0_16] : memref<1x3x1x128xf32, #tpu.memory_space<vmem>>, vector<1x1x1x128xf32>
    %37 = vector.shape_cast %36 : vector<1x1x1x128xf32> to vector<1x128xf32>
    %38 = vector.shape_cast %35 : vector<1x128xf32> to vector<1x1x1x128xf32>
    tpu.vector_store %arg4[%c0_13, %c0_14, %c0_15, %c0_16], %38 {strides = array<i32>} : memref<1x3x1x128xf32, #tpu.memory_space<vmem>>, vector<1x1x1x128xf32>,
    %c0_17 = arith.constant 0 : index
    %c0_18 = arith.constant 0 : index
    %c0_19 = arith.constant 0 : index
    %c0_20 = arith.constant 0 : index
    %39 = vector.load %arg5[%c0_17, %c0_18, %c0_19, %c0_20] : memref<1x3x1x128xf32, #tpu.memory_space<vmem>>, vector<1x1x1x128xf32>
    %40 = vector.shape_cast %39 : vector<1x1x1x128xf32> to vector<1x128xf32>
    %cst_21 = arith.constant dense<0.000000e+00> : vector<128xf32>
    %41 = vector.multi_reduction <add>, %24, %cst_21 [0] : vector<2x128xf32> to vector<128xf32>
    %42 = vector.shape_cast %41 : vector<128xf32> to vector<1x128xf32>
    %cst_22 = arith.constant dense<0.000000e+00> : vector<128xf32>
    %43 = vector.multi_reduction <add>, %28, %cst_22 [0] : vector<2x128xf32> to vector<128xf32>
    %44 = vector.shape_cast %43 : vector<128xf32> to vector<1x128xf32>
    %45 = arith.addf %42, %44 : vector<1x128xf32>
    %46 = arith.addf %40, %45 : vector<1x128xf32>
    %c0_23 = arith.constant 0 : index
    %c0_24 = arith.constant 0 : index
    %c0_25 = arith.constant 0 : index
    %c0_26 = arith.constant 0 : index
    %47 = vector.load %arg5[%c0_23, %c0_24, %c0_25, %c0_26] : memref<1x3x1x128xf32, #tpu.memory_space<vmem>>, vector<1x1x1x128xf32>
    %48 = vector.shape_cast %47 : vector<1x1x1x128xf32> to vector<1x128xf32>
    %49 = vector.shape_cast %46 : vector<1x128xf32> to vector<1x1x1x128xf32>
    tpu.vector_store %arg5[%c0_23, %c0_24, %c0_25, %c0_26], %49 {strides = array<i32>} : memref<1x3x1x128xf32, #tpu.memory_space<vmem>>, vector<1x1x1x128xf32>,
    %50 = arith.mulf %18, %23 : vector<2x128xf32>
    %c1_i32 = arith.constant 1 : i32
    %51 = vector.broadcast %c1_i32 : i32 to vector<2x128xi32>
    %52 = arith.cmpi eq, %6, %51 : vector<2x128xi32>
    %53 = arith.extui %52 : vector<2x128xi1> to vector<2x128xi32>
    %54 = arith.sitofp %53 : vector<2x128xi32> to vector<2x128xf32>
    %cst_27 = arith.constant 0.000000e+00 : f32
    %55 = vector.broadcast %cst_27 : f32 to vector<2x128xf32>
    %56 = arith.select %52, %50, %55 : vector<2x128xi1>, vector<2x128xf32>
    %c0_28 = arith.constant 0 : index
    %c1 = arith.constant 1 : index
    %c0_29 = arith.constant 0 : index
    %c0_30 = arith.constant 0 : index
    %57 = vector.load %arg4[%c0_28, %c1, %c0_29, %c0_30] : memref<1x3x1x128xf32, #tpu.memory_space<vmem>>, vector<1x1x1x128xf32>
    %58 = vector.shape_cast %57 : vector<1x1x1x128xf32> to vector<1x128xf32>
    %cst_31 = arith.constant dense<0.000000e+00> : vector<128xf32>
    %59 = vector.multi_reduction <add>, %56, %cst_31 [0] : vector<2x128xf32> to vector<128xf32>
    %60 = vector.shape_cast %59 : vector<128xf32> to vector<1x128xf32>
    %61 = arith.addf %58, %60 : vector<1x128xf32>
    %c0_32 = arith.constant 0 : index
    %c1_33 = arith.constant 1 : index
    %c0_34 = arith.constant 0 : index
    %c0_35 = arith.constant 0 : index
    %62 = vector.load %arg4[%c0_32, %c1_33, %c0_34, %c0_35] : memref<1x3x1x128xf32, #tpu.memory_space<vmem>>, vector<1x1x1x128xf32>
    %63 = vector.shape_cast %62 : vector<1x1x1x128xf32> to vector<1x128xf32>
    %64 = vector.shape_cast %61 : vector<1x128xf32> to vector<1x1x1x128xf32>
    tpu.vector_store %arg4[%c0_32, %c1_33, %c0_34, %c0_35], %64 {strides = array<i32>} : memref<1x3x1x128xf32, #tpu.memory_space<vmem>>, vector<1x1x1x128xf32>,
    %c0_36 = arith.constant 0 : index
    %c1_37 = arith.constant 1 : index
    %c0_38 = arith.constant 0 : index
    %c0_39 = arith.constant 0 : index
    %65 = vector.load %arg5[%c0_36, %c1_37, %c0_38, %c0_39] : memref<1x3x1x128xf32, #tpu.memory_space<vmem>>, vector<1x1x1x128xf32>
    %66 = vector.shape_cast %65 : vector<1x1x1x128xf32> to vector<1x128xf32>
    %cst_40 = arith.constant dense<0.000000e+00> : vector<128xf32>
    %67 = vector.multi_reduction <add>, %50, %cst_40 [0] : vector<2x128xf32> to vector<128xf32>
    %68 = vector.shape_cast %67 : vector<128xf32> to vector<1x128xf32>
    %cst_41 = arith.constant dense<0.000000e+00> : vector<128xf32>
    %69 = vector.multi_reduction <add>, %54, %cst_41 [0] : vector<2x128xf32> to vector<128xf32>
    %70 = vector.shape_cast %69 : vector<128xf32> to vector<1x128xf32>
    %71 = arith.addf %68, %70 : vector<1x128xf32>
    %72 = arith.addf %66, %71 : vector<1x128xf32>
    %c0_42 = arith.constant 0 : index
    %c1_43 = arith.constant 1 : index
    %c0_44 = arith.constant 0 : index
    %c0_45 = arith.constant 0 : index
    %73 = vector.load %arg5[%c0_42, %c1_43, %c0_44, %c0_45] : memref<1x3x1x128xf32, #tpu.memory_space<vmem>>, vector<1x1x1x128xf32>
    %74 = vector.shape_cast %73 : vector<1x1x1x128xf32> to vector<1x128xf32>
    %75 = vector.shape_cast %72 : vector<1x128xf32> to vector<1x1x1x128xf32>
    tpu.vector_store %arg5[%c0_42, %c1_43, %c0_44, %c0_45], %75 {strides = array<i32>} : memref<1x3x1x128xf32, #tpu.memory_space<vmem>>, vector<1x1x1x128xf32>,
    %76 = arith.mulf %20, %23 : vector<2x128xf32>
    %c2_i32 = arith.constant 2 : i32
    %77 = vector.broadcast %c2_i32 : i32 to vector<2x128xi32>
    %78 = arith.cmpi eq, %6, %77 : vector<2x128xi32>
    %79 = arith.extui %78 : vector<2x128xi1> to vector<2x128xi32>
    %80 = arith.sitofp %79 : vector<2x128xi32> to vector<2x128xf32>
    %cst_46 = arith.constant 0.000000e+00 : f32
    %81 = vector.broadcast %cst_46 : f32 to vector<2x128xf32>
    %82 = arith.select %78, %76, %81 : vector<2x128xi1>, vector<2x128xf32>
    %c0_47 = arith.constant 0 : index
    %c2 = arith.constant 2 : index
    %c0_48 = arith.constant 0 : index
    %c0_49 = arith.constant 0 : index
    %83 = vector.load %arg4[%c0_47, %c2, %c0_48, %c0_49] : memref<1x3x1x128xf32, #tpu.memory_space<vmem>>, vector<1x1x1x128xf32>
    %84 = vector.shape_cast %83 : vector<1x1x1x128xf32> to vector<1x128xf32>
    %cst_50 = arith.constant dense<0.000000e+00> : vector<128xf32>
    %85 = vector.multi_reduction <add>, %82, %cst_50 [0] : vector<2x128xf32> to vector<128xf32>
    %86 = vector.shape_cast %85 : vector<128xf32> to vector<1x128xf32>
    %87 = arith.addf %84, %86 : vector<1x128xf32>
    %c0_51 = arith.constant 0 : index
    %c2_52 = arith.constant 2 : index
    %c0_53 = arith.constant 0 : index
    %c0_54 = arith.constant 0 : index
    %88 = vector.load %arg4[%c0_51, %c2_52, %c0_53, %c0_54] : memref<1x3x1x128xf32, #tpu.memory_space<vmem>>, vector<1x1x1x128xf32>
    %89 = vector.shape_cast %88 : vector<1x1x1x128xf32> to vector<1x128xf32>
    %90 = vector.shape_cast %87 : vector<1x128xf32> to vector<1x1x1x128xf32>
    tpu.vector_store %arg4[%c0_51, %c2_52, %c0_53, %c0_54], %90 {strides = array<i32>} : memref<1x3x1x128xf32, #tpu.memory_space<vmem>>, vector<1x1x1x128xf32>,
    %c0_55 = arith.constant 0 : index
    %c2_56 = arith.constant 2 : index
    %c0_57 = arith.constant 0 : index
    %c0_58 = arith.constant 0 : index
    %91 = vector.load %arg5[%c0_55, %c2_56, %c0_57, %c0_58] : memref<1x3x1x128xf32, #tpu.memory_space<vmem>>, vector<1x1x1x128xf32>
    %92 = vector.shape_cast %91 : vector<1x1x1x128xf32> to vector<1x128xf32>
    %cst_59 = arith.constant dense<0.000000e+00> : vector<128xf32>
    %93 = vector.multi_reduction <add>, %76, %cst_59 [0] : vector<2x128xf32> to vector<128xf32>
    %94 = vector.shape_cast %93 : vector<128xf32> to vector<1x128xf32>
    %cst_60 = arith.constant dense<0.000000e+00> : vector<128xf32>
    %95 = vector.multi_reduction <add>, %80, %cst_60 [0] : vector<2x128xf32> to vector<128xf32>
    %96 = vector.shape_cast %95 : vector<128xf32> to vector<1x128xf32>
    %97 = arith.addf %94, %96 : vector<1x128xf32>
    %98 = arith.addf %92, %97 : vector<1x128xf32>
    %c0_61 = arith.constant 0 : index
    %c2_62 = arith.constant 2 : index
    %c0_63 = arith.constant 0 : index
    %c0_64 = arith.constant 0 : index
    %99 = vector.load %arg5[%c0_61, %c2_62, %c0_63, %c0_64] : memref<1x3x1x128xf32, #tpu.memory_space<vmem>>, vector<1x1x1x128xf32>
    %100 = vector.shape_cast %99 : vector<1x1x1x128xf32> to vector<1x128xf32>
    %101 = vector.shape_cast %98 : vector<1x128xf32> to vector<1x1x1x128xf32>
    tpu.vector_store %arg5[%c0_61, %c2_62, %c0_63, %c0_64], %101 {strides = array<i32>} : memref<1x3x1x128xf32, #tpu.memory_space<vmem>>, vector<1x1x1x128xf32>,
    return
  }
  func.func @transform_0(%arg0: i32, %arg1: i32) -> (i32, i32, i32, i32) {
    %c0_i32 = arith.constant 0 : i32
    %c0_i32_0 = arith.constant 0 : i32
    %c0_i32_1 = arith.constant 0 : i32
    return %arg0, %c0_i32, %arg1, %c0_i32_0 : i32, i32, i32, i32
  }
  func.func @transform_1(%arg0: i32, %arg1: i32) -> (i32, i32, i32) {
    %c0_i32 = arith.constant 0 : i32
    %c0_i32_0 = arith.constant 0 : i32
    return %arg0, %arg1, %c0_i32 : i32, i32, i32
  }
  func.func @transform_2(%arg0: i32, %arg1: i32) -> (i32, i32, i32, i32) {
    %c0_i32 = arith.constant 0 : i32
    %c0_i32_0 = arith.constant 0 : i32
    %c0_i32_1 = arith.constant 0 : i32
    %c0_i32_2 = arith.constant 0 : i32
    return %arg0, %c0_i32, %c0_i32_0, %c0_i32_1 : i32, i32, i32, i32
  }
  func.func @transform_3(%arg0: i32, %arg1: i32) -> (i32, i32, i32, i32) {
    %c0_i32 = arith.constant 0 : i32
    %c0_i32_0 = arith.constant 0 : i32
    %c0_i32_1 = arith.constant 0 : i32
    %c0_i32_2 = arith.constant 0 : i32
    return %arg0, %c0_i32, %c0_i32_0, %c0_i32_1 : i32, i32, i32, i32
  }
}

</mosaic_0001>

<bundles_post_ra>
// kernel: tpu_custom_call.1
= control target key start
LH: loop header
LB: loop body
LE: loop exit
PB: predicated region body
PF: predicated region fallthrough
CT: control target
= control target key end

     0   :  { %9 = vsyncpa [#allocation3], 0  ;;  %s1097_s0 = inlined_call_operand.hbm [shape: f32[2,3,2,128], index: 0, kind: input, shape index: {}]   ;;  %s1098_s1 = inlined_call_operand.hbm [shape: s32[2,2,128], index: 1, kind: input, shape index: {}]   ;;  %s1099_s2 = inlined_call_operand.hbm [shape: f32[2,3,1,128], index: 2, kind: output, shape index: {0}]   ;;  %s1100_s3 = inlined_call_operand.hbm [shape: f32[2,3,1,128], index: 3, kind: output, shape index: {1}]  }
   0x1   :  { %11 = vsyncpa [#allocation3 + $0x1], 0 }
   0x2   :  { %12 = vsyncpa [#allocation6], 0 }
   0x3   :  { %14 = vsyncpa [#allocation6 + $0x1], 0 }
   0x4   :  { %15 = vsyncpa [#allocation4], 0 }
   0x5   :  { %17 = vsyncpa [#allocation4 + $0x1], 0 }
   0x6   :  { %18 = vsyncpa [#allocation9], 0 }
   0x7   :  { %20 = vsyncpa [#allocation9 + $0x1], 0  ;;  %s898_s12 = smov 0   ;;  %s900_s13 = smov 0  }
   0x8   :  { %s902_s14 = smov 0   ;;  %s904_s15 = smov 0  }
   0x9   :  { %s906_s16 = smov 0   ;;  %s908_s17 = smov 0  }
   0xa LB: > { %s580_s18 = sadd.s32 4294967295, %s871_s17   ;;  %s581_s19 = sadd.s32 4294967294, %s871_s17   ;;  %s871_s17 = sphi %s908_s17, %s26_s17   ;;  %s867_s16 = sphi %s906_s16, %s1110_s16   ;;  %s863_s15 = sphi %s904_s15, %s1109_s15   ;;  %s859_s14 = sphi %s902_s14, %s1108_s14   ;;  %s855_s13 = sphi %s900_s13, %s1107_s13   ;;  %s851_s12 = sphi %s898_s12, %s1106_s12  }
   0xb   : > { %s38_s20 = sadd.s32 1, %s867_s16  ;;  %s47_s21 = sadd.s32 1, %s859_s14 }
   0xc   : > { %p40_p0 = scmp.ge.s32.totalorder %s38_s20, 2  ;;  %p54_p1 = scmp.ne.s32.totalorder %s859_s14, %s855_s13 }
   0xd   : > { %p55_p2 = scmp.eq.s32.totalorder %s871_s17, 0  ;;  %p60_p3 = scmp.ne.s32.totalorder %s855_s13, %s851_s12 }
   0xe   : > { %s1112_s20 = smov (%p40_p0, %s38_s20), 0  ;;  %p61_p5 = scmp.eq.s32.totalorder %s580_s18, 0 }
   0xf   : > { %p939_p4 = por %p55_p2, %p54_p1  ;;  %s42_s23 = ssub.s32 %s867_s16, %s1112_s20 }
  0x10   : > { %p112_p6 = scmp.eq.s32.totalorder %s580_s18, 1  ;;  %p45_p7 = scmp.eq.s32.totalorder %s42_s23, 0 }
  0x11   : > { %p945_p8 = por %p61_p5, %p60_p3  ;;  %p118_p10 = scmp.eq.s32.totalorder %s581_s19, 1 }
  0x12   : > { %p949_p9 = por %p112_p6, %p54_p1  ;;  %p583_p12 = scmp.ge.s32.totalorder %s871_s17, 2 }
  0x13   : > { %s954_s26 = scalar_select %p45_p7, %s859_s14, %s47_s21  }
  0x14   : > { %p956_p11 = por %p118_p10, %p60_p3  ;;  %p630_p13 = scmp.lt.s32.totalorder %s871_s17, 2 }
  0x15   : > { %s164_s28 = sand.u32 1, %s859_s14   ;;  %s603_s30 = smul.u32 6, %s867_s16 }
  0x16   : > { %s602_s29 = smul.u32 6, %s164_s28  ;;  %p966_p0 = pnand %p630_p13, %p939_p4 }
  0x17   : > { %s174_s7 = scalar_lea.hbm %s1097_s0, %s603_s30  ;;  %p587_p1 = scmp.ge.s32.totalorder %s871_s17, 1 }
  0x18   : > { %s168_s8 = scalar_lea.vmem [#allocation2], %s602_s29  ;;  %s175_s10 = sshll.u32 %s174_s7, 4  ;;  %s176_s10 = int_to_ptr.hbm [resolvable:$true] %s175_s10 }
  0x19   : > { %s177_s9 = sshll.u32 %s168_s8, 4  ;;  %s165_s11 = scalar_lea.sflag [#allocation3], %s164_s28  ;;  %s178_s9 = int_to_ptr.vmem [resolvable:$true] %s177_s9 }
  0x1a   : > { %s873_s18 = smov 32   ;;  %s874_s19 = smov 2  }
  0x1b   : > { %619 = dma.hbm_to_vmem [thread:$0]  (!%p966_p0), %s176_s10, 96, %s178_s9, %s165_s11, %s873_s18, %s873_s18, %s874_s19  }
  0x1c   : > { %p205_p2 = scmp.lt.s32.totalorder %s871_s17, 3  ;;  %s585_s21 = sshll.u32 %s164_s28, 1 }
  0x1d   : > { %s586_s22 = sshll.u32 %s867_s16, 1  ;;  %s191_s29 = scalar_lea.vmem [#allocation5], %s585_s21 }
  0x1e   : > { %p206_p3 = pnand %p587_p1, %p205_p2  ;;  %s196_s30 = scalar_lea.hbm %s1098_s1, %s586_s22 }
  0x1f   : > { %s200_s6 = sshll.u32 %s191_s29, 4  ;;  %s198_s7 = sshll.u32 %s196_s30, 4  ;;  %s201_s6 = int_to_ptr.vmem [resolvable:$true] %s200_s6  ;;  %s199_s7 = int_to_ptr.hbm [resolvable:$true] %s198_s7 }
  0x20   : > { %s188_s8 = scalar_lea.sflag [#allocation6], %s164_s28  ;;  %209 = sbr.rel (%p206_p3) target bundleno = 120 (0x78), region = 28 }
  0x21   : > { %622 = dma.hbm_to_vmem [thread:$0]  (!%p966_p0), %s199_s7, 32, %s201_s6, %s188_s8  }
  0x22   : > { %s984_s9 = sand.u32 (!%p206_p3), 1, %s855_s13  }
  0x23   : > { %s604_s10 = smul.u32 (!%p206_p3), 6, %s984_s9  ;;  %s212_s11 = scalar_lea.sflag (!%p206_p3), [#allocation3], %s984_s9 }
  0x25   : > { %s215_s18 = scalar_lea.vmem [#allocation2], %s604_s10 }
  0x26   : > { %834 = dma.done.wait (%p945_p8), %s212_s11, 96  }
  0x27   : > { %836 = vsyncadd (%p945_p8), %s212_s11, 4294967200  ;;  %s588_s28 = sshll.u32 %s984_s9, 1  ;;  %s222_s4 = scalar_lea.sflag [#allocation6], %s984_s9 }
  0x28   : > { %s225_s19 = scalar_lea.vmem [#allocation5], %s588_s28 }
  0x29   : > { %838 = dma.done.wait (%p945_p8), %s222_s4, 32  }
  0x2a   : > { %840 = vsyncadd (%p945_p8), %s222_s4, 4294967264  ;;  %s605_s21 = smul.u32 3, %s984_s9  ;;  %v875_v0 = vmov 0.0   ;;  %v269_v1 = vld [vmem:[%s215_s18] sm:$0x3]  ;;  %vm306_vm3 = vcmask 1041408  }
  0x2b   : > { %v270_v2 = vld [vmem:[%s215_s18 + $0x2] sm:$0x3]  ;;  %v271_v3 = vld [vmem:[%s215_s18 + $0x4] sm:$0x3]  ;;  %v272_v13 = vld [vmem:[%s225_s19] sm:$0x3] }
  0x2c   : > { %s999_s22 = scalar_lea.vmem [#allocation7], %s605_s21  ;;  %s1004_s23 = scalar_lea.vmem [#allocation8], %s605_s21  ;;  %v273_v4 = vmax.f32 %v269_v1, %v270_v2  ;;  %vm301_vm0 = vcmp.eq.s32.totalorder %v272_v13, 0  ;;  %vm335_vm1 = vcmp.eq.s32.totalorder %v272_v13, 1  ;;  %vm370_vm2 = vcmp.eq.s32.totalorder %v272_v13, 2 }
  0x2d   : > { %263 = vst [vmem:[%s999_s22] sm:$0x1] %v875_v0  ;;  %v589_v18 = vsel %vm301_vm0, 1.0, %v875_v0  ;;  %v590_v19 = vsel %vm335_vm1, 1.0, %v875_v0  ;;  %v595_v20 = vsel %vm370_vm2, 1.0, %v875_v0  ;;  %s606_s24 = smul.u32 3, %s863_s15  ;;  %s421_s8 = sshll.u32 %s999_s22, 4  ;;  %s422_s8 = int_to_ptr.vmem [resolvable:$true] %s421_s8 }
  0x2e   : > { %264 = vst [vmem:[%s999_s22 + $0x1] sm:$0x1] %v875_v0  ;;  %v274_v5 = vmax.f32 %v273_v4, %v271_v3  ;;  %v324_v21 = vsel %vm306_vm3, %v589_v18, 0.0  ;;  %v359_v22 = vsel %vm306_vm3, %v590_v19, 0.0  ;;  %v394_v23 = vsel %vm306_vm3, %v595_v20, 0.0  ;;  %s437_s11 = sshll.u32 %s1004_s23, 4  ;;  %s1044_s11 = int_to_ptr.vmem [resolvable:$true] %s437_s11 }
  0x2f   : > { %265 = vst [vmem:[%s999_s22 + $0x2] sm:$0x1] %v875_v0  ;;  %v325_v25 = vrot.slane %v324_v21, 4  ;;  %v360_v26 = vrot.slane %v359_v22, 4  ;;  %v395_v27 = vrot.slane %v394_v23, 4  ;;  %s420_s30 = scalar_lea.hbm %s1099_s2, %s606_s24  ;;  %s436_s7 = scalar_lea.hbm %s1100_s3, %s606_s24 }
  0x30   : > { %266 = vst [vmem:[%s1004_s23] sm:$0x1] %v875_v0  ;;  %v275_v6 = vsub.f32 %v269_v1, %v274_v5  ;;  %v278_v7 = vsub.f32 %v270_v2, %v274_v5  ;;  %v281_v8 = vsub.f32 %v271_v3, %v274_v5  ;;  %s423_s10 = sshll.u32 %s420_s30, 4  ;;  %s439_s18 = sshll.u32 %s436_s7, 4  ;;  %s424_s10 = int_to_ptr.hbm [resolvable:$true] %s423_s10  ;;  %s1046_s18 = int_to_ptr.hbm [resolvable:$true] %s439_s18 }
  0x31   : > { %267 = vst [vmem:[%s1004_s23 + $0x1] sm:$0x1] %v875_v0  ;;  %v326_v32 = vadd.f32 %v325_v25, %v324_v21  ;;  %v361_v33 = vadd.f32 %v360_v26, %v359_v22  ;;  %v396_v34 = vadd.f32 %v395_v27, %v394_v23  ;;  %s405_s28 = scalar_lea.sflag [#allocation4], %s984_s9  ;;  %s767_s4 = sshra.s32 %s424_s10, 4  ;;  %s768_s4 = int_to_ptr.hbm [resolvable:$true] %s767_s4 }
  0x32   : > { %268 = vst [vmem:[%s1004_s23 + $0x2] sm:$0x1] %v875_v0  ;;  %v276_v9 = vmul.f32 1.442695, %v275_v6  ;;  %v279_v10 = vmul.f32 1.442695, %v278_v7  ;;  %p774_p7 = scmp.lt.s32.totalorder %s768_s4, %s1099_s2 }
  0x33   : > { %v282_v11 = vmul.f32 1.442695, %v281_v8  ;;  %v327_v38 = vrot.slane %v326_v32, 2  ;;  %v362_v39 = vrot.slane %v361_v33, 2  ;;  %v397_v40 = vrot.slane %v396_v34, 2  ;;  %s769_s19 = scalar_lea.hbm %s768_s4, 3 }
  0x34   : > { %685 = vpow2.f32 %v276_v9  ;;  %v305_v27 = vld [vmem:[%s999_s22] sm:$0x1]  ;;  %p770_p4 = scmp.ne.s32.totalorder %s768_s4, %s769_s19  ;;  %s773_s15 = scalar_lea.hbm %s1099_s2, 6 }
  0x35   : > { %687 = vpow2.f32 %v279_v10  ;;  %v328_v46 = vadd.f32 %v327_v38, %v326_v32  ;;  %v363_v47 = vadd.f32 %v362_v39, %v361_v33  ;;  %v398_v48 = vadd.f32 %v397_v40, %v396_v34  ;;  %p775_p8 = scmp.lt.s32.totalorder %s773_s15, %s769_s19 }
  0x36   : > { %689 = vpow2.f32 %v282_v11  ;;  %v596_v40 = vld [vmem:[%s999_s22 + $0x2] sm:$0x1]  ;;  %p771_p5 = pnand %p770_p4, %p949_p9 }
  0x37   : > { %v329_v2 = vrot.slane %v328_v46, 1  ;;  %v364_v7 = vrot.slane %v363_v47, 1  ;;  %v316_v34 = vld [vmem:[%s1004_s23] sm:$0x1]  ;;  %p776_p10 = por %p775_p8, %p774_p7 }
  0x38   : > { %p772_p6 = pneg %p771_p5 }
  0x39   : > { %v365_v22 = vadd.f32 %v364_v7, %v363_v47 }
  0x3a   : > { %v686_v12 = vpop.eup %685  ;;  %p777_p13 = pnand %p776_p10, %p772_p6 }
  0x3b   : > { %v688_v14 = vpop.eup %687 }
  0x3c   : > { %v690_v15 = vpop.eup %689  ;;  %v284_v16 = vadd.f32 %v688_v14, %v686_v12 }
  0x3e   : > { %v285_v17 = vadd.f32 %v690_v15, %v284_v16 }
  0x40   : > { %691 = vrcp.f32 %v285_v17  ;;  %v297_v29 = vand.u32 2147483648, %v285_v17  ;;  %vm291_vm4 = vweird.f32 %v285_v17  ;;  %v295_v31 = vand.u32 2147483647, %v285_v17 }
  0x42   : > { %v298_v36 = vor.u32 1.1754944e-38, %v297_v29  ;;  %vm296_vm7 = vcmp.eq.f32.partialorder %v295_v31, 8.507059e+37  ;;  %v591_v29 = vld [vmem:[%s999_s22 + $0x1] sm:$0x1] }
  0x46   : > { %v692_v24 = vpop.eup %691 }
  0x47   : > { %v287_v28 = vmul.f32 %v692_v24, %v285_v17  ;;  %vm292_vm5 = vweird.f32 %v692_v24  ;;  %v330_v17 = vadd.f32 %v329_v2, %v328_v46 }
  0x48   : > { %vm293_vm6 = vmor %vm291_vm4, %vm292_vm5 }
  0x49   : > { %v288_v30 = vsub.f32 1.0, %v287_v28 }
  0x4b   : > { %v289_v35 = vmul.f32 %v692_v24, %v288_v30 }
  0x4d   : > { %v290_v37 = vadd.f32 %v692_v24, %v289_v35 }
  0x4f   : > { %v294_v41 = vsel %vm293_vm6, %v692_v24, %v290_v37 }
  0x50   : > { %v299_v42 = vsel %vm296_vm7, %v298_v36, %v294_v41  ;;  %v593_v36 = vld [vmem:[%s1004_s23 + $0x1] sm:$0x1] }
  0x51   : > { %v300_v43 = vmul.f32 %v686_v12, %v299_v42  ;;  %v334_v44 = vmul.f32 %v688_v14, %v299_v42  ;;  %v369_v45 = vmul.f32 %v690_v15, %v299_v42  ;;  %v399_v15 = vrot.slane %v398_v48, 1 }
  0x53   : > { %v304_v49 = vsel %vm301_vm0, %v300_v43, 0.0  ;;  %v317_v50 = vsel %vm306_vm3, %v300_v43, 0.0  ;;  %v338_v51 = vsel %vm335_vm1, %v334_v44, 0.0  ;;  %v352_v52 = vsel %vm306_vm3, %v334_v44, 0.0 }
  0x54   : > { %v307_v53 = vsel %vm306_vm3, %v304_v49, 0.0  ;;  %v318_v54 = vrot.slane %v317_v50, 4  ;;  %v341_v55 = vsel %vm306_vm3, %v338_v51, 0.0  ;;  %v353_v56 = vrot.slane %v352_v52, 4 }
  0x55   : > { %v308_v57 = vrot.slane %v307_v53, 4  ;;  %v342_v58 = vrot.slane %v341_v55, 4  ;;  %v373_v59 = vsel %vm370_vm2, %v369_v45, 0.0  ;;  %v387_v60 = vsel %vm306_vm3, %v369_v45, 0.0  ;;  %v598_v45 = vld [vmem:[%s1004_s23 + $0x2] sm:$0x1] }
  0x56   : > { %v319_v61 = vadd.f32 %v318_v54, %v317_v50  ;;  %v354_v62 = vadd.f32 %v353_v56, %v352_v52  ;;  %v376_v63 = vsel %vm306_vm3, %v373_v59, 0.0  ;;  %v388_v0 = vrot.slane %v387_v60, 4 }
  0x57   : > { %v309_v1 = vadd.f32 %v308_v57, %v307_v53  ;;  %v343_v3 = vadd.f32 %v342_v58, %v341_v55  ;;  %v377_v4 = vrot.slane %v376_v63, 4  ;;  %v400_v32 = vadd.f32 %v399_v15, %v398_v48 }
  0x58   : > { %v320_v5 = vrot.slane %v319_v61, 2  ;;  %v355_v6 = vrot.slane %v354_v62, 2  ;;  %v389_v8 = vadd.f32 %v388_v0, %v387_v60 }
  0x59   : > { %v310_v9 = vrot.slane %v309_v1, 2  ;;  %v344_v10 = vrot.slane %v343_v3, 2  ;;  %v378_v11 = vadd.f32 %v377_v4, %v376_v63 }
  0x5a   : > { %v321_v12 = vadd.f32 %v320_v5, %v319_v61  ;;  %v356_v13 = vadd.f32 %v355_v6, %v354_v62  ;;  %v390_v14 = vrot.slane %v389_v8, 2 }
  0x5b   : > { %v311_v16 = vadd.f32 %v310_v9, %v309_v1  ;;  %v345_v18 = vadd.f32 %v344_v10, %v343_v3  ;;  %v379_v19 = vrot.slane %v378_v11, 2 }
  0x5c   : > { %v322_v20 = vrot.slane %v321_v12, 1  ;;  %v357_v21 = vrot.slane %v356_v13, 1  ;;  %v391_v23 = vadd.f32 %v390_v14, %v389_v8 }
  0x5d   : > { %v312_v24 = vrot.slane %v311_v16, 1  ;;  %v346_v25 = vrot.slane %v345_v18, 1  ;;  %v380_v26 = vadd.f32 %v379_v19, %v378_v11 }
  0x5e   : > { %v323_v28 = vadd.f32 %v322_v20, %v321_v12  ;;  %v358_v30 = vadd.f32 %v357_v21, %v356_v13  ;;  %v392_v31 = vrot.slane %v391_v23, 1 }
  0x5f   : > { %v313_v33 = vadd.f32 %v312_v24, %v311_v16  ;;  %v347_v35 = vadd.f32 %v346_v25, %v345_v18  ;;  %v381_v37 = vrot.slane %v380_v26, 1 }
  0x60   : > { %v331_v38 = vadd.f32 %v330_v17, %v323_v28  ;;  %v366_v39 = vadd.f32 %v365_v22, %v358_v30  ;;  %v393_v41 = vadd.f32 %v392_v31, %v391_v23 }
  0x61   : > { %v314_v42 = vadd.f32 %v313_v33, %v305_v27  ;;  %v348_v43 = vadd.f32 %v591_v29, %v347_v35  ;;  %v382_v44 = vadd.f32 %v381_v37, %v380_v26 }
  0x62   : > { %v332_v46 = vadd.f32 %v331_v38, %v316_v34  ;;  %v367_v47 = vadd.f32 %v593_v36, %v366_v39  ;;  %v401_v48 = vadd.f32 %v400_v32, %v393_v41 }
  0x63   : > { %315 = vst [vmem:[%s999_s22] sm:$0x1] %v314_v42  ;;  %v383_v49 = vadd.f32 %v596_v40, %v382_v44 }
  0x64   : > { %333 = vst [vmem:[%s1004_s23] sm:$0x1] %v332_v46  ;;  %v402_v50 = vadd.f32 %v598_v45, %v401_v48 }
  0x65   : > { %592 = vst [vmem:[%s999_s22 + $0x1] sm:$0x1] %v348_v43 }
  0x66   : > { %594 = vst [vmem:[%s1004_s23 + $0x1] sm:$0x1] %v367_v47 }
  0x67   : > { %597 = vst [vmem:[%s999_s22 + $0x2] sm:$0x1] %v383_v49 }
  0x68   : > { %599 = vst [vmem:[%s1004_s23 + $0x2] sm:$0x1] %v402_v50 }
  0x69   : > { %780 = shalt.err (!%p777_p13)
}
  0x6a   : > { %s876_s22 = smov 16   ;;  %s877_s23 = smov 1  }
  0x6b   : > { %612 = dma.vmem_to_hbm [thread:$0]  (%p949_p9), %s422_s8, 48, %s424_s10, %s405_s28, %s876_s22, %s876_s22, %s877_s23  }
  0x6c   : > { %s410_s29 = scalar_lea.sflag [#allocation9], %s984_s9  ;;  %s795_s6 = sshra.s32 %s1046_s18, 4  ;;  %s796_s6 = int_to_ptr.hbm [resolvable:$true] %s795_s6 }
  0x6d   : > { %s797_s7 = scalar_lea.hbm %s796_s6, 3  ;;  %s801_s21 = scalar_lea.hbm %s1100_s3, 6 }
  0x6e   : > { %p798_p0 = scmp.ne.s32.totalorder %s796_s6, %s797_s7  ;;  %p802_p3 = scmp.lt.s32.totalorder %s796_s6, %s1100_s3 }
  0x6f   : > { %p803_p4 = scmp.lt.s32.totalorder %s801_s21, %s797_s7 }
  0x70   : > { %p799_p1 = pnand %p798_p0, %p949_p9 }
  0x71   : > { %p804_p5 = por %p803_p4, %p802_p3 }
  0x72   : > { %p800_p2 = pneg %p799_p1 }
  0x74   : > { %p805_p6 = pnand %p804_p5, %p800_p2 }
  0x76   : > { %808 = shalt.err (!%p805_p6)
}
  0x77   : > { %613 = dma.vmem_to_hbm [thread:$0]  (%p949_p9), %s1044_s11, 48, %s1046_s18, %s410_s29, %s876_s22, %s876_s22, %s877_s23  }
  0x78 PF: > { %s454_s9 = sand.u32 1, %s851_s12   ;;  %p624_p7 = pnand %p583_p12, %p956_p11 }
  0x79   : > { %s455_s8 = scalar_lea.sflag [#allocation4], %s454_s9 }
  0x7a   : > { %p625_p8 = pneg %p624_p7 }
  0x7c   : > { %842 = dma.done.wait (%p625_p8), %s455_s8, 48  }
  0x7d   : > { %844 = vsyncadd (%p625_p8), %s455_s8, 4294967248  ;;  %s465_s10 = scalar_lea.sflag [#allocation9], %s454_s9 }
  0x7e   : > { %846 = dma.done.wait (%p625_p8), %s465_s10, 48  }
  0x7f   : > { %848 = vsyncadd (%p625_p8), %s465_s10, 4294967248  ;;  %s26_s17 = sadd.s32 1, %s871_s17   ;;  %s1106_s12 = smov %s855_s13 }
  0x80   : > { %p23_p10 = scmp.ge.s32.totalorder %s26_s17, 4   ;;  %s1107_s13 = smov %s859_s14 }
  0x81   : > { %s1108_s14 = smov %s954_s26  ;;  %s1109_s15 = smov %s867_s16 }
  0x82   : > { %s1110_s16 = smov %s1112_s20  ;;  %25 = sbr.rel (!%p23_p10) target bundleno = 10 (0xa), region = 111 }
  0x87   :  { %471 = vsyncpa [#allocation3], 1 }
  0x88   :  { %473 = vsyncpa [#allocation3 + $0x1], 1 }
  0x89   :  { %474 = vsyncpa [#allocation6], 1 }
  0x8a   :  { %476 = vsyncpa [#allocation6 + $0x1], 1 }
  0x8b   :  { %477 = vsyncpa [#allocation4], 1 }
  0x8c   :  { %479 = vsyncpa [#allocation4 + $0x1], 1 }
  0x8d   :  { %480 = vsyncpa [#allocation9], 1 }
  0x8e   :  { %482 = vsyncpa [#allocation9 + $0x1], 1 }

</bundles_post_ra>
